<compile_context>
chip_gen: v7x
topology: tpu7x:2x2x1
jax: 0.10.0
libtpu: 0.0.40
codegen_flags: <defaults>
</compile_context>

<pallas_src>
import math

import jax
import jax.numpy as jnp
from jax.experimental import pallas as pl
from jax.experimental.pallas import tpu as pltpu


def _round_up(x, m):
    return ((x + m - 1) // m) * m


# ---------------------------------------------------------------------------
# Kernel: one (row-tile i, intermediate-chunk k) grid step.
#   h_k    = relu(x_i @ W1[:, k] + b1[k])       bf16 MXU, f32 bias/ReLU
#   acc_i += h_k @ W2[k, :]                     f32 VMEM accumulator
#   k == last:  out_i = acc_i + b2              cast to output dtype, stored once
# ---------------------------------------------------------------------------
def ffn_kernel(x_ref, w1_ref, b1_ref, w2_ref, b2_ref, o_ref, acc_ref):
    k = pl.program_id(1)

    @pl.when(k == 0)
    def _():
        acc_ref[...] = jnp.zeros_like(acc_ref)

    # MXU datapath in the weights' dtype (bf16 recommended); f32 accumulation.
    x = x_ref[...].astype(w1_ref.dtype)
    h = jnp.dot(x, w1_ref[...], preferred_element_type=jnp.float32)
    h = h + b1_ref[...].astype(jnp.float32)
    h = jnp.maximum(h, 0.0)                      # ReLU (dropout == identity in eval mode)
    acc_ref[...] += jnp.dot(h.astype(w2_ref.dtype), w2_ref[...],
                            preferred_element_type=jnp.float32)

    @pl.when(k == pl.num_programs(1) - 1)
    def _():
        o_ref[...] = (acc_ref[...] + b2_ref[...].astype(jnp.float32)).astype(o_ref.dtype)


# ---------------------------------------------------------------------------
# VMEM budgeting / tile selection
# ---------------------------------------------------------------------------
def _vmem_budget():
    """Generation-aware limits: ~80% of physical per-core VMEM as the scoped limit,
    and 75% of that as the tile-selection budget (headroom for internal scratch)."""
    try:
        phys = pltpu.get_tpu_info().vmem_capacity_bytes
    except Exception:
        phys = 64 * 1024 * 1024   # conservative fallback that fits every TPU generation
    limit = int(phys * 0.8)
    return limit, int(limit * 0.75)


def _fits(tm, ti, d, o, x_bytes, w_bytes, out_bytes, budget):
    # Every streamed block is double-buffered by the Pallas pipeline — including the
    # grid-invariant weight/bias blocks — so count 2x for all of them.
    buffered = 2 * (tm * d * x_bytes        # x row tile
                    + d * ti * w_bytes      # W1 chunk
                    + ti * o * w_bytes      # W2 chunk
                    + (ti + o) * 4          # biases (f32)
                    + tm * o * out_bytes)   # out tile
    live = tm * o * 4 + tm * ti * 4         # f32 accumulator scratch + f32 intermediate chunk
    return buffered + live <= budget


def _choose_tiles(n, d, i, o, *, x_bytes, w_bytes, out_bytes, budget):
    nr = _round_up(max(n, 1), 16)           # row tiles in multiples of 16 (bf16 sublane packing)
    tm_big = sorted({min(c, nr) for c in (1024, 512, 256, 128)}, reverse=True)
    tm_all = sorted({min(c, nr) for c in (1024, 512, 256, 128, 64, 32, 16)}, reverse=True)

    # Phase 1: full intermediate-dim residency -> weights DMA'd from HBM exactly once.
    for tm in tm_big:
        if _fits(tm, i, d, o, x_bytes, w_bytes, out_bytes, budget):
            return tm, i, i
    # Phase 2: chunk the intermediate dim -> weight blocks re-streamed once per row tile,
    # so prefer the largest row tile first, then the largest chunk.
    ti_cands = [c for c in (2048, 1024, 512, 256, 128) if c <= _round_up(i, 128)] or [128]
    for tm in tm_all:
        for ti in ti_cands:
            if _fits(tm, ti, d, o, x_bytes, w_bytes, out_bytes, budget):
                return tm, ti, _round_up(i, ti)
    # Last resort: minimal tiles (the compiler will report it if even this exceeds VMEM).
    return tm_all[-1], 128, _round_up(i, 128)


# ---------------------------------------------------------------------------
# Wrapper
# ---------------------------------------------------------------------------
def ffn_projection(x, w_in, b_in, w_out, b_out, *, compute_dtype=jnp.bfloat16):
    """x: [..., D]; w_in: [D, I]; b_in: [I]; w_out: [I, O]; b_out: [O] -> [..., O].

    Weights are stored transposed vs. PyTorch ([in, out] layout) so the kernel computes
    x @ W + b directly on the MXU.  The matmul datapath runs in `compute_dtype` (bf16 by
    default for v5e/v6e/v7x MXU peak); accumulation, bias-add and ReLU are f32.  For
    production, pass x / weights already in bf16 so all casts here are no-ops.
    """
    *lead, D = x.shape
    x2 = x.reshape(-1, D)
    N = x2.shape[0]
    I = w_in.shape[1]
    O = w_out.shape[1]

    w1 = w_in.astype(compute_dtype)
    w2 = w_out.astype(compute_dtype)
    b1 = b_in.astype(jnp.float32)
    b2 = b_out.astype(jnp.float32)

    vmem_limit, budget = _vmem_budget()
    tm, ti, ip = _choose_tiles(
        N, D, I, O,
        x_bytes=jnp.dtype(x.dtype).itemsize,
        w_bytes=jnp.dtype(compute_dtype).itemsize,
        out_bytes=jnp.dtype(x.dtype).itemsize,
        budget=budget)

    # Zero-pad the intermediate dim only when it is chunked.  Pad columns are mathematically
    # inert: relu(0 + 0) = 0 multiplies zero rows of W2.  x / D / O are never padded or copied.
    if ip != I:
        w1 = jnp.pad(w1, ((0, 0), (0, ip - I)))
        b1 = jnp.pad(b1, (0, ip - I))
        w2 = jnp.pad(w2, ((0, ip - I), (0, 0)))
    b1 = b1.reshape(1, ip)
    b2 = b2.reshape(1, O)

    grid = (pl.cdiv(N, tm), ip // ti)

    out = pl.pallas_call(
        ffn_kernel,
        out_shape=jax.ShapeDtypeStruct((N, O), x.dtype),
        grid=grid,
        in_specs=[
            pl.BlockSpec((tm, D), lambda i, k: (i, 0)),   # x row tile (constant over k)
            pl.BlockSpec((D, ti), lambda i, k: (0, k)),   # W1 chunk
            pl.BlockSpec((1, ti), lambda i, k: (0, k)),   # b1 chunk
            pl.BlockSpec((ti, O), lambda i, k: (k, 0)),   # W2 chunk
            pl.BlockSpec((1, O), lambda i, k: (0, 0)),    # b2 (resident)
        ],
        out_specs=pl.BlockSpec((tm, O), lambda i, k: (i, 0)),
        scratch_shapes=[pltpu.VMEM((tm, O), jnp.float32)],   # f32 accumulator
        compiler_params=pltpu.CompilerParams(
            dimension_semantics=("parallel", "arbitrary"),   # rows parallel, reduction last
            vmem_limit_bytes=vmem_limit,
        ),
    )(x2, w1, b1, w2, b2)

    return out.reshape(*lead, O)


def make_params(key, input_dim, ffn_ratio=1.5, output_dim=None, dtype=jnp.float32):
    """Matches the module's init_weights(): kaiming_normal_(nonlinearity='relu', fan_in)
    -> std = sqrt(2 / fan_in); biases = 0.  Weights returned in [in, out] layout."""
    if output_dim is None:
        output_dim = input_dim
    intermed_dim = int(output_dim * ffn_ratio)

    k1, k2 = jax.random.split(key)
    std_in = math.sqrt(2.0 / input_dim)
    std_out = math.sqrt(2.0 / intermed_dim)
    w_in = (jax.random.normal(k1, (input_dim, intermed_dim), jnp.float32) * std_in).astype(dtype)
    b_in = jnp.zeros((intermed_dim,), dtype)
    w_out = (jax.random.normal(k2, (intermed_dim, output_dim), jnp.float32) * std_out).astype(dtype)
    b_out = jnp.zeros((output_dim,), dtype)
    return w_in, b_in, w_out, b_out


if __name__ == "__main__":
    key = jax.random.PRNGKey(0)
    kx, kp = jax.random.split(key)

    batch, seq, hidden = 2, 8, 32          # input_dim = 32
    ffn_ratio = 1.5                        # intermed_dim = int(32 * 1.5) = 48

    x = jax.random.normal(kx, (batch, seq, hidden), jnp.float32)
    w_in, b_in, w_out, b_out = make_params(kp, hidden, ffn_ratio, dtype=jnp.float32)

    y = ffn_projection(x, w_in, b_in, w_out, b_out, compute_dtype=jnp.bfloat16)
    jax.block_until_ready(y)

    # Reference with the same bf16-MXU / f32-accumulate datapath (eval mode: dropout = identity).
    x2 = x.reshape(-1, hidden)
    h = jnp.dot(x2.astype(jnp.bfloat16), w_in.astype(jnp.bfloat16),
                preferred_element_type=jnp.float32) + b_in
    h = jnp.maximum(h, 0.0)
    ref = jnp.dot(h.astype(jnp.bfloat16), w_out.astype(jnp.bfloat16),
                  preferred_element_type=jnp.float32) + b_out
    ref = ref.reshape(batch, seq, -1).astype(x.dtype)

    assert y.shape == (batch, seq, hidden), y.shape
    assert jnp.allclose(y, ref, atol=2e-3, rtol=2e-3), \
        f"max abs err = {float(jnp.max(jnp.abs(y - ref)))}"

    print("KERNEL_OK")
</pallas_src>

<mosaic_0001>
module attributes {stable_mosaic.version = 11 : i64} {
  func.func @ffn_kernel(%arg0: i32, %arg1: i32, %arg2: memref<16x32xf32, #tpu.memory_space<vmem>>, %arg3: memref<32x48xbf16, #tpu.memory_space<vmem>>, %arg4: memref<1x48xf32, #tpu.memory_space<vmem>>, %arg5: memref<48x32xbf16, #tpu.memory_space<vmem>>, %arg6: memref<1x32xf32, #tpu.memory_space<vmem>>, %arg7: memref<16x32xf32, #tpu.memory_space<vmem>>, %arg8: memref<16x32xf32, #tpu.memory_space<vmem>>) attributes {dimension_semantics = [#tpu.dimension_semantics<parallel>, #tpu.dimension_semantics<arbitrary>], iteration_bounds = array<i64: 1, 1>, scalar_prefetch = 0 : i64, scratch_operands = 1 : i64, tpu.core_type = #tpu.core_type<tc>, window_params = [{transform_indices = @transform_0, window_bounds = array<i64: 16, 32>}, {transform_indices = @transform_1, window_bounds = array<i64: 32, 48>}, {transform_indices = @transform_2, window_bounds = array<i64: 1, 48>}, {transform_indices = @transform_3, window_bounds = array<i64: 48, 32>}, {pipeline_mode = #tpu.pipeline_mode<synchronous>, transform_indices = @transform_4, window_bounds = array<i64: 1, 32>}, {transform_indices = @transform_5, window_bounds = array<i64: 16, 32>}]} {
    %c0_i32 = arith.constant 0 : i32
    %0 = arith.cmpi eq, %arg1, %c0_i32 : i32
    %1 = arith.extui %0 : i1 to i32
    %c0_i32_0 = arith.constant 0 : i32
    %2 = arith.cmpi ne, %1, %c0_i32_0 : i32
    scf.if %2 {
      %cst_16 = arith.constant 0.000000e+00 : f32
      %21 = vector.broadcast %cst_16 : f32 to vector<16x32xf32>
      %c0_17 = arith.constant 0 : index
      %c0_18 = arith.constant 0 : index
      %22 = vector.load %arg8[%c0_17, %c0_18] : memref<16x32xf32, #tpu.memory_space<vmem>>, vector<16x32xf32>
      tpu.vector_store %arg8[%c0_17, %c0_18], %21 {strides = array<i32>} : memref<16x32xf32, #tpu.memory_space<vmem>>, vector<16x32xf32>,
    } else {
    }
    %c0 = arith.constant 0 : index
    %c0_1 = arith.constant 0 : index
    %3 = vector.load %arg2[%c0, %c0_1] : memref<16x32xf32, #tpu.memory_space<vmem>>, vector<16x32xf32>
    %4 = arith.truncf %3 : vector<16x32xf32> to vector<16x32xbf16>
    %c0_2 = arith.constant 0 : index
    %c0_3 = arith.constant 0 : index
    %5 = vector.load %arg3[%c0_2, %c0_3] : memref<32x48xbf16, #tpu.memory_space<vmem>>, vector<32x48xbf16>
    %cst = arith.constant dense<0.000000e+00> : vector<16x48xf32>
    %6 = tpu.matmul %4, %5, %cst {dimension_numbers = #tpu.dot_dimension_numbers<[1], [0], [0], [1], [0, 0, 1, 1], [], []>} : vector<16x32xbf16>, vector<32x48xbf16>, vector<16x48xf32> -> vector<16x48xf32>
    %c0_4 = arith.constant 0 : index
    %c0_5 = arith.constant 0 : index
    %7 = vector.load %arg4[%c0_4, %c0_5] : memref<1x48xf32, #tpu.memory_space<vmem>>, vector<1x48xf32>
    %8 = vector.broadcast %7 : vector<1x48xf32> to vector<16x48xf32>
    %9 = arith.addf %6, %8 : vector<16x48xf32>
    %cst_6 = arith.constant 0.000000e+00 : f32
    %10 = vector.broadcast %cst_6 : f32 to vector<16x48xf32>
    %11 = arith.maximumf %9, %10 : vector<16x48xf32>
    %c0_7 = arith.constant 0 : index
    %c0_8 = arith.constant 0 : index
    %12 = vector.load %arg8[%c0_7, %c0_8] : memref<16x32xf32, #tpu.memory_space<vmem>>, vector<16x32xf32>
    %13 = arith.truncf %11 : vector<16x48xf32> to vector<16x48xbf16>
    %c0_9 = arith.constant 0 : index
    %c0_10 = arith.constant 0 : index
    %14 = vector.load %arg5[%c0_9, %c0_10] : memref<48x32xbf16, #tpu.memory_space<vmem>>, vector<48x32xbf16>
    %cst_11 = arith.constant dense<0.000000e+00> : vector<16x32xf32>
    %15 = tpu.matmul %13, %14, %cst_11 {dimension_numbers = #tpu.dot_dimension_numbers<[1], [0], [0], [1], [0, 0, 1, 1], [], []>} : vector<16x48xbf16>, vector<48x32xbf16>, vector<16x32xf32> -> vector<16x32xf32>
    %16 = arith.addf %12, %15 : vector<16x32xf32>
    %c0_12 = arith.constant 0 : index
    %c0_13 = arith.constant 0 : index
    %17 = vector.load %arg8[%c0_12, %c0_13] : memref<16x32xf32, #tpu.memory_space<vmem>>, vector<16x32xf32>
    tpu.vector_store %arg8[%c0_12, %c0_13], %16 {strides = array<i32>} : memref<16x32xf32, #tpu.memory_space<vmem>>, vector<16x32xf32>,
    %c0_i32_14 = arith.constant 0 : i32
    %18 = arith.cmpi eq, %arg1, %c0_i32_14 : i32
    %19 = arith.extui %18 : i1 to i32
    %c0_i32_15 = arith.constant 0 : i32
    %20 = arith.cmpi ne, %19, %c0_i32_15 : i32
    scf.if %20 {
      %c0_16 = arith.constant 0 : index
      %c0_17 = arith.constant 0 : index
      %21 = vector.load %arg8[%c0_16, %c0_17] : memref<16x32xf32, #tpu.memory_space<vmem>>, vector<16x32xf32>
      %c0_18 = arith.constant 0 : index
      %c0_19 = arith.constant 0 : index
      %22 = vector.load %arg6[%c0_18, %c0_19] : memref<1x32xf32, #tpu.memory_space<vmem>>, vector<1x32xf32>
      %23 = vector.broadcast %22 : vector<1x32xf32> to vector<16x32xf32>
      %24 = arith.addf %21, %23 : vector<16x32xf32>
      %c0_20 = arith.constant 0 : index
      %c0_21 = arith.constant 0 : index
      %25 = vector.load %arg7[%c0_20, %c0_21] : memref<16x32xf32, #tpu.memory_space<vmem>>, vector<16x32xf32>
      tpu.vector_store %arg7[%c0_20, %c0_21], %24 {strides = array<i32>} : memref<16x32xf32, #tpu.memory_space<vmem>>, vector<16x32xf32>,
    } else {
    }
    return
  }
  func.func @transform_0(%arg0: i32, %arg1: i32) -> (i32, i32) {
    %c0_i32 = arith.constant 0 : i32
    %c0_i32_0 = arith.constant 0 : i32
    return %arg0, %c0_i32 : i32, i32
  }
  func.func @transform_1(%arg0: i32, %arg1: i32) -> (i32, i32) {
    %c0_i32 = arith.constant 0 : i32
    %c0_i32_0 = arith.constant 0 : i32
    return %c0_i32, %arg1 : i32, i32
  }
  func.func @transform_2(%arg0: i32, %arg1: i32) -> (i32, i32) {
    %c0_i32 = arith.constant 0 : i32
    %c0_i32_0 = arith.constant 0 : i32
    return %c0_i32, %arg1 : i32, i32
  }
  func.func @transform_3(%arg0: i32, %arg1: i32) -> (i32, i32) {
    %c0_i32 = arith.constant 0 : i32
    %c0_i32_0 = arith.constant 0 : i32
    return %arg1, %c0_i32 : i32, i32
  }
  func.func @transform_4(%arg0: i32, %arg1: i32) -> (i32, i32) {
    %c0_i32 = arith.constant 0 : i32
    %c0_i32_0 = arith.constant 0 : i32
    %c0_i32_1 = arith.constant 0 : i32
    return %c0_i32, %c0_i32_0 : i32, i32
  }
  func.func @transform_5(%arg0: i32, %arg1: i32) -> (i32, i32) {
    %c0_i32 = arith.constant 0 : i32
    %c0_i32_0 = arith.constant 0 : i32
    return %arg0, %c0_i32 : i32, i32
  }
}

</mosaic_0001>

<bundles_post_ra>
// kernel: tpu_custom_call.1
= control target key start
LH: loop header
LB: loop body
LE: loop exit
PB: predicated region body
PF: predicated region fallthrough
CT: control target
= control target key end

     0   :  { %v278_v1 = vmov 0.0   ;;  %vm279_vm0 = vmmov 0   ;;  %vm26_vm1 = vcmask 261120   ;;  %s359_s0 = inlined_call_operand.vmem [shape: f32[16,32], index: 0, kind: input, shape index: {}]   ;;  %s360_s1 = inlined_call_operand.vmem [shape: bf16[32,48], index: 1, kind: input, shape index: {}]   ;;  %s361_s2 = inlined_call_operand.vmem [shape: f32[1,48], index: 2, kind: input, shape index: {}]   ;;  %s362_s3 = inlined_call_operand.vmem [shape: bf16[48,32], index: 3, kind: input, shape index: {}]   ;;  %s363_s4 = inlined_call_operand.vmem [shape: f32[1,32], index: 4, kind: input, shape index: {}]   ;;  %s364_s5 = inlined_call_operand.hbm [shape: f32[16,32], index: 5, kind: output, shape index: {}]  }
   0x1   :  { %v249_v0 = vld [vmem:[%s360_s1] sm:$0xff]   ;;  %226 = vmatprep.subr.bf16.mxu0 %v278_v1  ;;  %v250_v2 = vld [vmem:[%s360_s1 + $0x8] sm:$0xff]   ;;  %234 = vmatprep.subr.bf16.mxu1 %v278_v1  ;;  %27 = vst.msk [vmem:[#allocation2] sm:$0xff] %vm26_vm1, %v278_v1  ;;  %28 = vst.msk [vmem:[#allocation2 + $0x8] sm:$0xff] %vm26_vm1, %v278_v1 }
   0x2   :  { %227 = vmatpush3.bf16.msra.mxu0 %v249_v0  ;;  %230 = vmatprep.mubr.msk.bf16.mxu0 %vm279_vm0, %v278_v1  ;;  %v29_v3 = vld [vmem:[%s359_s0] sm:$0xff]  ;;  %v30_v4 = vld [vmem:[%s359_s0 + $0x8] sm:$0xff] }
   0x3   :  { %228 = vmatprep.subr.bf16.mxu0 %v278_v1  ;;  %v251_v5 = vld [vmem:[%s362_s3] sm:$0xff]   ;;  %240 = vmatprep.mubr.msk.bf16.mxu1 %vm279_vm0, %v278_v1  ;;  %v31_v6 = vpack.c.bf16 %v30_v4, %v29_v3 }
   0x4   :  { %235 = vmatpush3.bf16.msra.mxu1 %v251_v5 }
   0x5   :  { %10 = vsyncpa [#allocation4], 0  ;;  %236 = vmatprep.subr.bf16.mxu1 %v278_v1  ;;  %v252_v7 = vld [vmem:[%s362_s3 + $0x8] sm:$0xff]   ;;  %v253_v8 = vld [vmem:[%s362_s3 + $0x10] sm:$0xff]   ;;  %vm129_vm2 = vcmask 392192   ;;  %s280_s7 = smov [#allocation3]  }
   0x6   :  { %229 = vmatpush3.bf16.msra.mxu0 %v250_v2  ;;  %v210_v9 = vld [vmem:[%s361_s2] ss:$0 sm:$0xff]  ;;  %s199_s8 = sshll.u32 %s280_s7, 4  ;;  %s200_s8 = int_to_ptr.vmem [resolvable:$true] %s199_s8 }
   0x7   :  { %v218_v27 = vld [vmem:[%s363_s4] ss:$0 sm:$0xff]  ;;  %s254_s9 = scalar_lea.vmem %s200_s8, 256  ;;  %p259_p1 = scmp.lt.s32.totalorder %s200_s8, %s200_s8 }
   0x8   :  { %237 = vmatpush3.bf16.msra.mxu1 %v252_v7  ;;  %v102_v19 = vld [vmem:[#allocation2] sm:$0xff]  ;;  %v103_v21 = vld [vmem:[#allocation2 + $0x8] sm:$0xff]  ;;  %p255_p0 = scmp.ne.s32.totalorder %s200_s8, %s254_s9  ;;  %p260_p2 = scmp.lt.s32.totalorder %s254_s9, %s254_s9 }
   0x9   :  { %231 = vmatmul.mubr.msk.bf16.vlgmr.msra.gmra.mrb[0].mxu0 %vm26_vm1, %v31_v6  ;;  %238 = vmatprep.subr.bf16.mxu1 %v278_v1 }
   0xa   :  { %p261_p3 = por %p260_p2, %p259_p1 }
   0xc   :  { %239 = vmatpush3.bf16.msra.mxu1 %v253_v8  ;;  %p262_p4 = pnand %p261_p3, %p255_p0 }
  0xdc   :  { %v93_v10 = vpop.f32.mrb[0].mxu0 }
  0xdd   :  { %v94_v11 = vadd.f32 %v210_v9, %v93_v10  ;;  %v232_v12 = vpop.f32.mrb[1].mxu0 }
  0xde   :  { %v96_v13 = vpop.f32.mrb[2].mxu0 }
  0xdf   :  { %v97_v14 = vadd.f32 %v210_v9, %v96_v13  ;;  %v233_v15 = vpop.f32.mrb[3].mxu0  ;;  %v100_v16 = vmax.f32 %v94_v11, 0.0 }
  0xe1   :  { %v101_v17 = vmax.f32 %v97_v14, 0.0 }
  0xe3   :  { %v104_v18 = vpack.c.bf16 %v101_v17, %v100_v16 }
  0xe5   :  { %241 = vmatmul.mubr.msk.bf16.vlgmr.msra.gmra.mrb[0].mxu1 %vm129_vm2, %v104_v18 }
 0x1b8   :  { %v167_v20 = vpop.f32.mrb[0].mxu1 }
 0x1b9   :  { %v174_v22 = vadd.f32 %v167_v20, %v102_v19  ;;  %v242_v23 = vpop.f32.mrb[1].mxu1 }
 0x1ba   :  { %v170_v24 = vpop.f32.mrb[2].mxu1 }
 0x1bb   :  { %176 = vst.msk [vmem:[#allocation2] sm:$0xff] %vm26_vm1, %v174_v22  ;;  %v175_v25 = vadd.f32 %v170_v24, %v103_v21  ;;  %v243_v26 = vpop.f32.mrb[3].mxu1 }
 0x1bd   :  { %177 = vst.msk [vmem:[#allocation2 + $0x8] sm:$0xff] %vm26_vm1, %v175_v25 }
 0x1c2   :  { %v181_v28 = vld [vmem:[#allocation2] sm:$0xff] }
 0x1c3   :  { %v190_v29 = vadd.f32 %v218_v27, %v181_v28 }
 0x1c4   :  { %v182_v30 = vld [vmem:[#allocation2 + $0x8] sm:$0xff] }
 0x1c5   :  { %v191_v31 = vadd.f32 %v218_v27, %v182_v30  ;;  %192 = vst.msk [vmem:[#allocation3] sm:$0xff] %vm26_vm1, %v190_v29 }
 0x1c7   :  { %193 = vst.msk [vmem:[#allocation3 + $0x8] sm:$0xff] %vm26_vm1, %v191_v31 }
 0x1c8   :  { %265 = shalt.err (!%p262_p4)
}
 0x1c9   :  { %s266_s11 = scalar_lea.hbm %s364_s5, 256 }
 0x1ca   :  { %p267_p5 = scmp.ne.s32.totalorder %s364_s5, %s266_s11  ;;  %p270_p6 = scmp.lt.u32.totalorder %s266_s11, %s364_s5 }
 0x1cc   :  { %p272_p7 = pnand %p270_p6, %p267_p5 }
 0x1ce   :  { %275 = shalt.err (!%p272_p7)
}
 0x1cf   :  { %s281_s16 = smov 128   ;;  %s282_s17 = smov 8  }
 0x1d0   :  { %205 = dma.vmem_to_hbm [thread:$0]  %s200_s8, 256, %s364_s5, [#allocation4], %s281_s16, %s281_s16, %s282_s17  }
 0x1d1   :  { %276 = dma.done.wait [#allocation4], 256  }
 0x1d2   :  { %277 = vsyncadd [#allocation4], 4294967040 }
 0x1d3   :  { %209 = vsyncpa [#allocation4], 1 }

</bundles_post_ra>
